<compile_context>
chip_gen: v7x
topology: tpu7x:2x2x1
jax: 0.10.0
libtpu: 0.0.40
codegen_flags: <defaults>
</compile_context>

<pallas_src>
import jax
import jax.numpy as jnp
from jax import lax
from jax.experimental import pallas as pl
from jax.experimental.pallas import tpu as pltpu

_EPS = 1e-12  # matches torch.nn.functional.normalize default eps


def _l2_normalize_kernel(x_ref, o_ref):
    # x_ref, o_ref: (bn, C, tile_hw) block in VMEM.  Reduction over axis=1 is
    # strictly per-(n, lane); garbage lanes of a partial last tile never
    # contaminate valid lanes, and their writes are discarded by Pallas.
    x = x_ref[...]
    xf = x.astype(jnp.float32)
    sumsq = jnp.sum(xf * xf, axis=1, keepdims=True)           # (bn, 1, tile_hw)
    # max(sqrt(s), eps) == sqrt(max(s, eps^2)); rsqrt lands on the EUP slot.
    scale = lax.rsqrt(jnp.maximum(sumsq, _EPS * _EPS))
    if x.dtype == jnp.float32:
        o_ref[...] = xf * scale
    else:
        # Sub-32-bit: rescale in the native dtype (halves VALU/vreg pressure on
        # v6e/v7x) instead of materializing a second full f32 block.
        o_ref[...] = (x * scale.astype(x.dtype)).astype(o_ref.dtype)


def _vmem_capacity_bytes():
    try:
        return int(pltpu.get_tpu_info().vmem_capacity_bytes)
    except Exception:
        return 128 << 20  # conservative v5e/v6e default


def _choose_tiles(n, c, hw, dtype, max_tile_bytes):
    """Pick (bn, tile_hw) so one block is lane-dense, multi-MiB, and VMEM-safe."""
    itemsize = jnp.dtype(dtype).itemsize
    pack = max(1, 4 // itemsize)              # elems per 32-bit sublane word
    c_pad = pl.cdiv(c, 8 * pack) * (8 * pack)  # true (8,128)-tiled sublane footprint
    # Per-element VMEM cost: in + out, double-buffered (4x native) + ~1 f32 temp.
    per_elem = 4 * itemsize + 4

    if hw < 128:
        # Lane axis must be the full (sub-128) extent; stores are masked, so the
        # lever here is batching N per block.
        tile_hw = hw
    else:
        budget_lanes = max(128, (max_tile_bytes // max(1, per_elem * c_pad)) // 128 * 128)
        tile_hw = min((hw // 128) * 128, budget_lanes)

    # Batch N until each block carries ~2 MiB of native data (overhead amortization),
    # staying inside the per-block byte budget.
    target_native = 2 << 20
    block_native = max(1, c_pad * tile_hw * itemsize)
    bn = max(1, min(n, target_native // block_native))
    bn = max(1, min(bn, max_tile_bytes // max(1, per_elem * c_pad * tile_hw)))

    # For large inputs keep >= 2 grid steps so both v7x TensorCores get work.
    if pl.cdiv(hw, tile_hw) == 1 and n > 1:
        total_native = n * c_pad * hw * itemsize
        if total_native >= (4 << 20):
            bn = min(bn, pl.cdiv(n, 2))
    return bn, tile_hw


def normalize_dim1(x, max_tile_bytes=None):
    """F.normalize(x, p=2.0, dim=1) for NCHW (or any rank>=2) inputs."""
    orig_shape = x.shape
    N, C = orig_shape[0], orig_shape[1]
    hw = 1
    for d in orig_shape[2:]:
        hw *= d
    x3 = x.reshape(N, C, hw)                   # contiguous view, no data movement

    vmem_cap = _vmem_capacity_bytes()
    if max_tile_bytes is None:
        # ~8 MiB on 128 MiB chips (v5e/v6e), ~4 MiB on v7x's 64 MiB.
        max_tile_bytes = min(8 << 20, vmem_cap // 16)
    vmem_limit = min(48 << 20, vmem_cap // 2)

    bn, tile_hw = _choose_tiles(N, C, hw, x.dtype, max_tile_bytes)
    grid = (pl.cdiv(N, bn), pl.cdiv(hw, tile_hw))   # partial blocks masked by Pallas

    itemsize = jnp.dtype(x.dtype).itemsize
    cost = pl.CostEstimate(
        flops=3 * N * C * hw,
        transcendentals=N * hw,
        bytes_accessed=2 * N * C * hw * itemsize,
    )

    out3 = pl.pallas_call(
        _l2_normalize_kernel,
        out_shape=jax.ShapeDtypeStruct((N, C, hw), x.dtype),
        grid=grid,
        in_specs=[pl.BlockSpec((bn, C, tile_hw), lambda n, s: (n, 0, s))],
        out_specs=pl.BlockSpec((bn, C, tile_hw), lambda n, s: (n, 0, s)),
        compiler_params=pltpu.CompilerParams(
            dimension_semantics=("parallel", "parallel"),
            vmem_limit_bytes=vmem_limit,
        ),
        cost_estimate=cost,
    )(x3)

    return out3.reshape(orig_shape)


if __name__ == "__main__":
    key = jax.random.PRNGKey(0)
    # Small NCHW input consistent with a conv-style feature map.
    x = jax.random.normal(key, (2, 4, 16, 16), dtype=jnp.float32)

    out = normalize_dim1(x)
    out = jax.block_until_ready(out)

    # Reference (plain JAX) check of F.normalize(x, p=2.0, dim=1).
    norm = jnp.sqrt(jnp.sum(x * x, axis=1, keepdims=True))
    ref = x / jnp.maximum(norm, _EPS)
    assert out.shape == x.shape and out.dtype == x.dtype
    assert jnp.allclose(out, ref, atol=1e-6, rtol=1e-5)

    print("KERNEL_OK")
</pallas_src>

<mosaic_0001>
module attributes {stable_mosaic.version = 11 : i64} {
  func.func @_l2_normalize_kernel(%arg0: i32, %arg1: i32, %arg2: memref<2x4x256xf32, #tpu.memory_space<vmem>>, %arg3: memref<2x4x256xf32, #tpu.memory_space<vmem>>) attributes {dimension_semantics = [#tpu.dimension_semantics<parallel>, #tpu.dimension_semantics<parallel>], iteration_bounds = array<i64: 1, 1>, scalar_prefetch = 0 : i64, scratch_operands = 0 : i64, tpu.core_type = #tpu.core_type<tc>, window_params = [{transform_indices = @transform_0, window_bounds = array<i64: 2, 4, 256>}, {transform_indices = @transform_1, window_bounds = array<i64: 2, 4, 256>}]} {
    %c0 = arith.constant 0 : index
    %c0_0 = arith.constant 0 : index
    %c0_1 = arith.constant 0 : index
    %0 = vector.load %arg2[%c0, %c0_0, %c0_1] : memref<2x4x256xf32, #tpu.memory_space<vmem>>, vector<2x4x256xf32>
    %1 = arith.mulf %0, %0 : vector<2x4x256xf32>
    %cst = arith.constant dense<0.000000e+00> : vector<2x256xf32>
    %2 = vector.multi_reduction <add>, %1, %cst [1] : vector<2x4x256xf32> to vector<2x256xf32>
    %3 = vector.shape_cast %2 : vector<2x256xf32> to vector<2x1x256xf32>
    %cst_2 = arith.constant 1.000000e-24 : f32
    %4 = vector.broadcast %cst_2 : f32 to vector<2x1x256xf32>
    %5 = arith.maximumf %3, %4 : vector<2x1x256xf32>
    %6 = math.rsqrt %5 : vector<2x1x256xf32>
    %7 = vector.broadcast %6 : vector<2x1x256xf32> to vector<2x4x256xf32>
    %8 = arith.mulf %0, %7 : vector<2x4x256xf32>
    %c0_3 = arith.constant 0 : index
    %c0_4 = arith.constant 0 : index
    %c0_5 = arith.constant 0 : index
    %9 = vector.load %arg3[%c0_3, %c0_4, %c0_5] : memref<2x4x256xf32, #tpu.memory_space<vmem>>, vector<2x4x256xf32>
    tpu.vector_store %arg3[%c0_3, %c0_4, %c0_5], %8 {strides = array<i32>} : memref<2x4x256xf32, #tpu.memory_space<vmem>>, vector<2x4x256xf32>,
    return
  }
  func.func @transform_0(%arg0: i32, %arg1: i32) -> (i32, i32, i32) {
    %c0_i32 = arith.constant 0 : i32
    %c0_i32_0 = arith.constant 0 : i32
    return %arg0, %c0_i32, %arg1 : i32, i32, i32
  }
  func.func @transform_1(%arg0: i32, %arg1: i32) -> (i32, i32, i32) {
    %c0_i32 = arith.constant 0 : i32
    %c0_i32_0 = arith.constant 0 : i32
    return %arg0, %c0_i32, %arg1 : i32, i32, i32
  }
}

</mosaic_0001>

<bundles_post_ra>
// kernel: tpu_custom_call.1
= control target key start
LH: loop header
LB: loop body
LE: loop exit
PB: predicated region body
PF: predicated region fallthrough
CT: control target
= control target key end

     0   :  { %6 = vsyncpa [#allocation3], 0  ;;  %s203_s0 = inlined_call_operand.hbm [shape: f32[2,4,256], index: 0, kind: input, shape index: {}]   ;;  %s204_s1 = inlined_call_operand.hbm [shape: f32[2,4,256], index: 1, kind: output, shape index: {}]  }
   0x1   :  { %7 = vsyncpa [#allocation4], 0  ;;  %s159_s6 = smov [#allocation2]   ;;  %s111_s10 = scalar_lea.hbm %s203_s0, 256 }
   0x2   :  { %s13_s7 = sshll.u32 %s159_s6, 4  ;;  %p112_p0 = scmp.ne.s32.totalorder %s203_s0, %s111_s10  ;;  %s14_s7 = int_to_ptr.vmem [resolvable:$true] %s13_s7 }
   0x3   :  { %p115_p1 = scmp.lt.u32.totalorder %s111_s10, %s203_s0 }
   0x5   :  { %p117_p2 = pnand %p115_p1, %p112_p0 }
   0x7   :  { %120 = shalt.err (!%p117_p2)
}
   0x8   :  { %s121_s15 = scalar_lea.vmem %s14_s7, 256  ;;  %p126_p4 = scmp.lt.s32.totalorder %s14_s7, %s14_s7 }
   0x9   :  { %p122_p3 = scmp.ne.s32.totalorder %s14_s7, %s121_s15  ;;  %p127_p5 = scmp.lt.s32.totalorder %s121_s15, %s121_s15 }
   0xb   :  { %p128_p6 = por %p127_p5, %p126_p4 }
   0xd   :  { %p129_p7 = pnand %p128_p6, %p122_p3 }
   0xf   :  { %132 = shalt.err (!%p129_p7)
}
  0x10   :  { %s160_s16 = smov 128   ;;  %s161_s17 = smov 8  }
  0x11   :  { %19 = dma.hbm_to_vmem [thread:$0]  %s203_s0, 256, %s14_s7, [#allocation3], %s160_s16, %s160_s16, %s161_s17  }
  0x12   :  { %155 = dma.done.wait [#allocation3], 256  }
  0x13   :  { %156 = vsyncadd [#allocation3], 4294967040  ;;  %v23_v0 = vld [vmem:[#allocation2] sm:$0xff]  ;;  %vm33_vm0 = vcmask 1043456   ;;  %v24_v1 = vld [vmem:[#allocation2 + $0x8] sm:$0xff]  ;;  %s162_s0 = smov [#allocation5]  }
  0x14   :  { %v25_v2 = vmul.f32 %v23_v0, %v23_v0  ;;  %v26_v3 = vmul.f32 %v24_v1, %v24_v1  ;;  %s87_s20 = sshll.u32 %s162_s0, 4  ;;  %s88_s20 = int_to_ptr.vmem [resolvable:$true] %s87_s20 }
  0x15   :  { %s133_s21 = scalar_lea.vmem %s88_s20, 256  ;;  %p138_p9 = scmp.lt.s32.totalorder %s88_s20, %s88_s20 }
  0x16   :  { %v29_v4 = vcombine.high %v25_v2, %v25_v2  ;;  %v34_v5 = vsel %vm33_vm0, %v25_v2, 0.0  ;;  %v30_v6 = vcombine.high %v26_v3, %v26_v3  ;;  %v48_v7 = vsel %vm33_vm0, %v26_v3, 0.0  ;;  %p134_p8 = scmp.ne.s32.totalorder %s88_s20, %s133_s21  ;;  %p139_p10 = scmp.lt.s32.totalorder %s133_s21, %s133_s21 }
  0x17   :  { %v35_v8 = vrot.slane %v34_v5, 4  ;;  %v49_v9 = vrot.slane %v48_v7, 4 }
  0x18   :  { %v41_v10 = vsel %vm33_vm0, %v29_v4, 0.0  ;;  %v55_v11 = vsel %vm33_vm0, %v30_v6, 0.0  ;;  %p140_p11 = por %p139_p10, %p138_p9 }
  0x19   :  { %v36_v12 = vadd.f32 %v35_v8, %v34_v5  ;;  %v42_v13 = vrot.slane %v41_v10, 4  ;;  %v50_v14 = vadd.f32 %v49_v9, %v48_v7  ;;  %v56_v15 = vrot.slane %v55_v11, 4 }
  0x1a   :  { %p141_p12 = pnand %p140_p11, %p134_p8 }
  0x1b   :  { %v37_v16 = vrot.slane %v36_v12, 2  ;;  %v43_v17 = vadd.f32 %v42_v13, %v41_v10  ;;  %v51_v18 = vrot.slane %v50_v14, 2  ;;  %v57_v19 = vadd.f32 %v56_v15, %v55_v11 }
  0x1d   :  { %v38_v20 = vadd.f32 %v37_v16, %v36_v12  ;;  %v44_v21 = vrot.slane %v43_v17, 2  ;;  %v52_v22 = vadd.f32 %v51_v18, %v50_v14  ;;  %v58_v23 = vrot.slane %v57_v19, 2 }
  0x1f   :  { %v39_v24 = vrot.slane %v38_v20, 1  ;;  %v45_v25 = vadd.f32 %v44_v21, %v43_v17  ;;  %v53_v26 = vrot.slane %v52_v22, 1  ;;  %v59_v27 = vadd.f32 %v58_v23, %v57_v19 }
  0x21   :  { %v40_v28 = vadd.f32 %v39_v24, %v38_v20  ;;  %v46_v29 = vrot.slane %v45_v25, 1  ;;  %v54_v30 = vadd.f32 %v53_v26, %v52_v22  ;;  %v60_v31 = vrot.slane %v59_v27, 1 }
  0x23   :  { %v47_v32 = vadd.f32 %v46_v29, %v45_v25  ;;  %v62_v33 = vmax.f32 %v40_v28, 1e-24  ;;  %v61_v34 = vadd.f32 %v60_v31, %v59_v27  ;;  %v64_v35 = vmax.f32 %v54_v30, 1e-24 }
  0x25   :  { %v63_v36 = vmax.f32 %v47_v32, 1e-24  ;;  %103 = vrsqrt.f32 %v62_v33  ;;  %v65_v37 = vmax.f32 %v61_v34, 1e-24 }
  0x26   :  { %105 = vrsqrt.f32 %v64_v35 }
  0x27   :  { %107 = vrsqrt.f32 %v63_v36 }
  0x28   :  { %109 = vrsqrt.f32 %v65_v37 }
  0x2f   :  { %v104_v38 = vpop.eup %103 }
  0x30   :  { %v106_v39 = vpop.eup %105 }
  0x31   :  { %v108_v40 = vpop.eup %107 }
  0x32   :  { %v110_v41 = vpop.eup %109  ;;  %v74_v42 = vcombine.low %v104_v38, %v108_v40 }
  0x33   :  { %v75_v43 = vcombine.low %v106_v39, %v110_v41 }
  0x34   :  { %v78_v44 = vmul.f32 %v74_v42, %v23_v0 }
  0x35   :  { %v79_v45 = vmul.f32 %v75_v43, %v24_v1 }
  0x36   :  { %80 = vst [vmem:[#allocation5] sm:$0xff] %v78_v44 }
  0x37   :  { %81 = vst [vmem:[#allocation5 + $0x8] sm:$0xff] %v79_v45 }
  0x38   :  { %144 = shalt.err (!%p141_p12)
}
  0x39   :  { %s145_s24 = scalar_lea.hbm %s204_s1, 256 }
  0x3a   :  { %p146_p13 = scmp.ne.s32.totalorder %s204_s1, %s145_s24  ;;  %p149_p0 = scmp.lt.u32.totalorder %s145_s24, %s204_s1 }
  0x3c   :  { %p151_p1 = pnand %p149_p0, %p146_p13 }
  0x3e   :  { %154 = shalt.err (!%p151_p1)
}
  0x3f   :  { %93 = dma.vmem_to_hbm [thread:$0]  %s88_s20, 256, %s204_s1, [#allocation4], %s160_s16, %s160_s16, %s161_s17  }
  0x40   :  { %157 = dma.done.wait [#allocation4], 256  }
  0x41   :  { %158 = vsyncadd [#allocation4], 4294967040 }
  0x42   :  { %97 = vsyncpa [#allocation3], 1 }
  0x43   :  { %98 = vsyncpa [#allocation4], 1 }

</bundles_post_ra>
